<compile_context>
chip_gen: v7x
topology: tpu7x:2x2x1
jax: 0.10.0
libtpu: 0.0.40
codegen_flags: <defaults>
</compile_context>

<pallas_src>
import numpy as np
import jax
import jax.numpy as jnp
from jax.experimental import pallas as pl
from jax.experimental.pallas import tpu as pltpu

LOG_STD_MAX = 2.0
LOG_STD_MIN = -10.0


def _state_actor_kernel(obs_ref, noise_ref,
                        w1_ref, b1_ref, w2_ref, b2_ref,
                        wh_ref, bh_ref,
                        out_ref):
    A = noise_ref.shape[-1]
    TB = out_ref.shape[0]
    pad_cols = out_ref.shape[1] - (3 * A + 1)

    x = obs_ref[...]                                             # (TB, obs_dim) f32

    # --- MLP trunk (Linear -> ReLU -> Linear -> ReLU) on the MXU ---
    h1 = jnp.dot(x, w1_ref[...], preferred_element_type=jnp.float32) + b1_ref[...]
    h1 = jnp.maximum(h1, 0.0)
    h2 = jnp.dot(h1, w2_ref[...], preferred_element_type=jnp.float32) + b2_ref[...]
    h2 = jnp.maximum(h2, 0.0)                                    # net_out (TB, H)

    # --- fused heads: single (H, 2A) matmul, then static lane slices ---
    heads = jnp.dot(h2, wh_ref[...], preferred_element_type=jnp.float32) + bh_ref[...]
    mu = heads[:, 0:A]
    log_std = heads[:, A:2 * A]

    # log_std squashing to [LOG_STD_MIN, LOG_STD_MAX]
    log_std = jnp.tanh(log_std)
    log_std = LOG_STD_MIN + 0.5 * (LOG_STD_MAX - LOG_STD_MIN) * (log_std + 1.0)

    # reparameterized sample (compute_pi=True path)
    std = jnp.exp(log_std)
    noise = noise_ref[...]
    pi = mu + noise * std

    mu_t = jnp.tanh(mu)
    pi_t = jnp.tanh(pi)

    # gaussian_logprob + tanh squash correction fused into ONE cross-lane reduction
    log_pi = jnp.sum(
        -0.5 * noise * noise - log_std
        - jnp.log(jnp.maximum(1.0 - pi_t * pi_t, 0.0) + 1e-6),
        axis=-1, keepdims=True)
    log_pi = log_pi - 0.5 * np.log(2.0 * np.pi) * A              # (TB, 1)

    # pack everything into one lane-dense slab and issue a single unmasked store
    pad = jnp.zeros((TB, pad_cols), jnp.float32)
    out_ref[...] = jnp.concatenate([mu_t, pi_t, log_std, log_pi, pad], axis=-1)


def _round_up(x, m):
    return ((x + m - 1) // m) * m


def state_actor_forward(obs, noise, params, tile_b_max=256):
    """obs: (B, obs_dim) f32, noise: (B, A) f32, params: dict of weights/biases."""
    B, obs_dim = obs.shape
    H = params["w1"].shape[1]
    A = params["wmu"].shape[1]

    # Fuse the two heads into a single (H, 2A) weight / (1, 2A) bias.
    wh = jnp.concatenate([params["wmu"], params["wls"]], axis=1)
    bh = jnp.concatenate([params["bmu"], params["bls"]], axis=1)

    # Batch tiling: TILE_B multiple of 8 sublanes, up to tile_b_max; pad B to a multiple.
    tile_b = _round_up(B, 8) if B <= tile_b_max else tile_b_max
    B_pad = _round_up(B, tile_b)
    if B_pad != B:
        obs = jnp.pad(obs, ((0, B_pad - B), (0, 0)))
        noise = jnp.pad(noise, ((0, B_pad - B), (0, 0)))
    n_tiles = B_pad // tile_b

    n_cols = 3 * A + 1                       # mu | pi | log_std | log_pi
    padw = _round_up(n_cols, 128)            # lane-dense output slab width

    def batch_spec(shape):
        return pl.BlockSpec(shape, lambda i: (i, 0))

    def const_spec(shape):
        return pl.BlockSpec(shape, lambda i: (0, 0))

    slab = pl.pallas_call(
        _state_actor_kernel,
        out_shape=jax.ShapeDtypeStruct((B_pad, padw), jnp.float32),
        grid=(n_tiles,),
        in_specs=[
            batch_spec((tile_b, obs_dim)),   # obs      (blocked on batch)
            batch_spec((tile_b, A)),         # noise    (blocked on batch)
            const_spec((obs_dim, H)),        # w1       (VMEM-resident)
            const_spec((1, H)),              # b1
            const_spec((H, H)),              # w2
            const_spec((1, H)),              # b2
            const_spec((H, 2 * A)),          # fused head weight
            const_spec((1, 2 * A)),          # fused head bias
        ],
        out_specs=batch_spec((tile_b, padw)),
        compiler_params=pltpu.CompilerParams(
            dimension_semantics=("parallel",)),   # engages 2nd TC on v7x
    )(obs, noise,
      params["w1"], params["b1"], params["w2"], params["b2"],
      wh, bh)

    mu = slab[:B, 0:A]
    pi = slab[:B, A:2 * A]
    log_std = slab[:B, 2 * A:3 * A]
    log_pi = slab[:B, 3 * A]                 # (B,)
    return mu, pi, log_pi, log_std


def _orthogonal(key, in_dim, out_dim, gain=1.0):
    """Deterministic orthogonal init (matches semantics of nn.init.orthogonal_),
    returned in (in_dim, out_dim) layout for x @ W."""
    big, small = max(in_dim, out_dim), min(in_dim, out_dim)
    a = jax.random.normal(key, (big, small), dtype=jnp.float32)
    q, r = jnp.linalg.qr(a)
    q = q * jnp.sign(jnp.diagonal(r))
    if in_dim >= out_dim:
        w = q[:in_dim, :out_dim]
    else:
        w = q.T[:in_dim, :out_dim]
    return gain * w.astype(jnp.float32)


def init_params(key, obs_dim, hidden_dim, act_dim):
    k1, k2, k3, k4 = jax.random.split(key, 4)
    return {
        "w1": _orthogonal(k1, obs_dim, hidden_dim),
        "b1": jnp.zeros((1, hidden_dim), jnp.float32),
        "w2": _orthogonal(k2, hidden_dim, hidden_dim),
        "b2": jnp.zeros((1, hidden_dim), jnp.float32),
        "wmu": _orthogonal(k3, hidden_dim, act_dim),
        "bmu": jnp.zeros((1, act_dim), jnp.float32),
        "wls": _orthogonal(k4, hidden_dim, act_dim),
        "bls": jnp.zeros((1, act_dim), jnp.float32),
    }


if __name__ == "__main__":
    # Small shapes consistent with StateActor(obs_shape=(16,), action_shape=(4,), hidden_dim=32)
    B, OBS_DIM, HIDDEN, ACT_DIM = 8, 16, 32, 4

    root = jax.random.PRNGKey(0)
    k_params, k_obs, k_noise = jax.random.split(root, 3)

    params = init_params(k_params, OBS_DIM, HIDDEN, ACT_DIM)
    obs = jax.random.normal(k_obs, (B, OBS_DIM), dtype=jnp.float32)
    noise = jax.random.normal(k_noise, (B, ACT_DIM), dtype=jnp.float32)  # torch.randn_like(mu)

    mu, pi, log_pi, log_std = state_actor_forward(obs, noise, params)
    jax.block_until_ready((mu, pi, log_pi, log_std))

    # Pure-JAX reference for sanity
    def ref(obs, noise, p):
        h1 = jnp.maximum(obs @ p["w1"] + p["b1"], 0.0)
        h2 = jnp.maximum(h1 @ p["w2"] + p["b2"], 0.0)
        mu = h2 @ p["wmu"] + p["bmu"]
        ls = jnp.tanh(h2 @ p["wls"] + p["bls"])
        ls = LOG_STD_MIN + 0.5 * (LOG_STD_MAX - LOG_STD_MIN) * (ls + 1.0)
        pi = mu + noise * jnp.exp(ls)
        lp = jnp.sum(-0.5 * noise ** 2 - ls, -1) - 0.5 * np.log(2 * np.pi) * ACT_DIM
        mu_t, pi_t = jnp.tanh(mu), jnp.tanh(pi)
        lp = lp - jnp.sum(jnp.log(jnp.maximum(1 - pi_t ** 2, 0.0) + 1e-6), -1)
        return mu_t, pi_t, lp, ls

    r_mu, r_pi, r_lp, r_ls = ref(obs, noise, params)
    np.testing.assert_allclose(np.asarray(mu), np.asarray(r_mu), rtol=1e-5, atol=1e-5)
    np.testing.assert_allclose(np.asarray(pi), np.asarray(r_pi), rtol=1e-5, atol=1e-5)
    np.testing.assert_allclose(np.asarray(log_pi), np.asarray(r_lp), rtol=1e-4, atol=1e-4)
    np.testing.assert_allclose(np.asarray(log_std), np.asarray(r_ls), rtol=1e-5, atol=1e-5)

    print("KERNEL_OK")
</pallas_src>

<mosaic_0001>
module attributes {stable_mosaic.version = 11 : i64} {
  func.func @_state_actor_kernel(%arg0: i32, %arg1: memref<8x16xf32, #tpu.memory_space<vmem>>, %arg2: memref<8x4xf32, #tpu.memory_space<vmem>>, %arg3: memref<16x32xf32, #tpu.memory_space<vmem>>, %arg4: memref<1x32xf32, #tpu.memory_space<vmem>>, %arg5: memref<32x32xf32, #tpu.memory_space<vmem>>, %arg6: memref<1x32xf32, #tpu.memory_space<vmem>>, %arg7: memref<32x8xf32, #tpu.memory_space<vmem>>, %arg8: memref<1x8xf32, #tpu.memory_space<vmem>>, %arg9: memref<8x128xf32, #tpu.memory_space<vmem>>) attributes {dimension_semantics = [#tpu.dimension_semantics<parallel>], iteration_bounds = array<i64: 1>, scalar_prefetch = 0 : i64, scratch_operands = 0 : i64, tpu.core_type = #tpu.core_type<tc>, window_params = [{transform_indices = @transform_0, window_bounds = array<i64: 8, 16>}, {transform_indices = @transform_1, window_bounds = array<i64: 8, 4>}, {pipeline_mode = #tpu.pipeline_mode<synchronous>, transform_indices = @transform_2, window_bounds = array<i64: 16, 32>}, {pipeline_mode = #tpu.pipeline_mode<synchronous>, transform_indices = @transform_3, window_bounds = array<i64: 1, 32>}, {pipeline_mode = #tpu.pipeline_mode<synchronous>, transform_indices = @transform_4, window_bounds = array<i64: 32, 32>}, {pipeline_mode = #tpu.pipeline_mode<synchronous>, transform_indices = @transform_5, window_bounds = array<i64: 1, 32>}, {pipeline_mode = #tpu.pipeline_mode<synchronous>, transform_indices = @transform_6, window_bounds = array<i64: 32, 8>}, {pipeline_mode = #tpu.pipeline_mode<synchronous>, transform_indices = @transform_7, window_bounds = array<i64: 1, 8>}, {transform_indices = @transform_8, window_bounds = array<i64: 8, 128>}]} {
    %c0 = arith.constant 0 : index
    %c0_0 = arith.constant 0 : index
    %0 = vector.load %arg1[%c0, %c0_0] : memref<8x16xf32, #tpu.memory_space<vmem>>, vector<8x16xf32>
    %c0_1 = arith.constant 0 : index
    %c0_2 = arith.constant 0 : index
    %1 = vector.load %arg3[%c0_1, %c0_2] : memref<16x32xf32, #tpu.memory_space<vmem>>, vector<16x32xf32>
    %cst = arith.constant dense<0.000000e+00> : vector<8x32xf32>
    %2 = tpu.matmul %0, %1, %cst {dimension_numbers = #tpu.dot_dimension_numbers<[1], [0], [0], [1], [0, 0, 1, 1], [], []>} : vector<8x16xf32>, vector<16x32xf32>, vector<8x32xf32> -> vector<8x32xf32>
    %c0_3 = arith.constant 0 : index
    %c0_4 = arith.constant 0 : index
    %3 = vector.load %arg4[%c0_3, %c0_4] : memref<1x32xf32, #tpu.memory_space<vmem>>, vector<1x32xf32>
    %4 = vector.broadcast %3 : vector<1x32xf32> to vector<8x32xf32>
    %5 = arith.addf %2, %4 : vector<8x32xf32>
    %cst_5 = arith.constant 0.000000e+00 : f32
    %6 = vector.broadcast %cst_5 : f32 to vector<8x32xf32>
    %7 = arith.maximumf %5, %6 : vector<8x32xf32>
    %c0_6 = arith.constant 0 : index
    %c0_7 = arith.constant 0 : index
    %8 = vector.load %arg5[%c0_6, %c0_7] : memref<32x32xf32, #tpu.memory_space<vmem>>, vector<32x32xf32>
    %cst_8 = arith.constant dense<0.000000e+00> : vector<8x32xf32>
    %9 = tpu.matmul %7, %8, %cst_8 {dimension_numbers = #tpu.dot_dimension_numbers<[1], [0], [0], [1], [0, 0, 1, 1], [], []>} : vector<8x32xf32>, vector<32x32xf32>, vector<8x32xf32> -> vector<8x32xf32>
    %c0_9 = arith.constant 0 : index
    %c0_10 = arith.constant 0 : index
    %10 = vector.load %arg6[%c0_9, %c0_10] : memref<1x32xf32, #tpu.memory_space<vmem>>, vector<1x32xf32>
    %11 = vector.broadcast %10 : vector<1x32xf32> to vector<8x32xf32>
    %12 = arith.addf %9, %11 : vector<8x32xf32>
    %cst_11 = arith.constant 0.000000e+00 : f32
    %13 = vector.broadcast %cst_11 : f32 to vector<8x32xf32>
    %14 = arith.maximumf %12, %13 : vector<8x32xf32>
    %c0_12 = arith.constant 0 : index
    %c0_13 = arith.constant 0 : index
    %15 = vector.load %arg7[%c0_12, %c0_13] : memref<32x8xf32, #tpu.memory_space<vmem>>, vector<32x8xf32>
    %cst_14 = arith.constant dense<0.000000e+00> : vector<8x8xf32>
    %16 = tpu.matmul %14, %15, %cst_14 {dimension_numbers = #tpu.dot_dimension_numbers<[1], [0], [0], [1], [0, 0, 1, 1], [], []>} : vector<8x32xf32>, vector<32x8xf32>, vector<8x8xf32> -> vector<8x8xf32>
    %c0_15 = arith.constant 0 : index
    %c0_16 = arith.constant 0 : index
    %17 = vector.load %arg8[%c0_15, %c0_16] : memref<1x8xf32, #tpu.memory_space<vmem>>, vector<1x8xf32>
    %18 = vector.broadcast %17 : vector<1x8xf32> to vector<8x8xf32>
    %19 = arith.addf %16, %18 : vector<8x8xf32>
    %20 = vector.extract_strided_slice %19 {offsets = [0, 0], sizes = [8, 4], strides = [1, 1]} : vector<8x8xf32> to vector<8x4xf32>
    %21 = vector.extract_strided_slice %19 {offsets = [0, 4], sizes = [8, 4], strides = [1, 1]} : vector<8x8xf32> to vector<8x4xf32>
    %22 = math.tanh %21 : vector<8x4xf32>
    %cst_17 = arith.constant 1.000000e+00 : f32
    %23 = vector.broadcast %cst_17 : f32 to vector<8x4xf32>
    %24 = arith.addf %22, %23 : vector<8x4xf32>
    %cst_18 = arith.constant 6.000000e+00 : f32
    %25 = vector.broadcast %cst_18 : f32 to vector<8x4xf32>
    %26 = arith.mulf %25, %24 : vector<8x4xf32>
    %cst_19 = arith.constant -1.000000e+01 : f32
    %27 = vector.broadcast %cst_19 : f32 to vector<8x4xf32>
    %28 = arith.addf %27, %26 : vector<8x4xf32>
    %29 = math.exp %28 : vector<8x4xf32>
    %c0_20 = arith.constant 0 : index
    %c0_21 = arith.constant 0 : index
    %30 = vector.load %arg2[%c0_20, %c0_21] : memref<8x4xf32, #tpu.memory_space<vmem>>, vector<8x4xf32>
    %31 = arith.mulf %30, %29 : vector<8x4xf32>
    %32 = arith.addf %20, %31 : vector<8x4xf32>
    %33 = math.tanh %20 : vector<8x4xf32>
    %34 = math.tanh %32 : vector<8x4xf32>
    %cst_22 = arith.constant -5.000000e-01 : f32
    %35 = vector.broadcast %cst_22 : f32 to vector<8x4xf32>
    %36 = arith.mulf %35, %30 : vector<8x4xf32>
    %37 = arith.mulf %36, %30 : vector<8x4xf32>
    %38 = arith.subf %37, %28 : vector<8x4xf32>
    %39 = arith.mulf %34, %34 : vector<8x4xf32>
    %cst_23 = arith.constant 1.000000e+00 : f32
    %40 = vector.broadcast %cst_23 : f32 to vector<8x4xf32>
    %41 = arith.subf %40, %39 : vector<8x4xf32>
    %cst_24 = arith.constant 0.000000e+00 : f32
    %42 = vector.broadcast %cst_24 : f32 to vector<8x4xf32>
    %43 = arith.maximumf %41, %42 : vector<8x4xf32>
    %cst_25 = arith.constant 9.99999997E-7 : f32
    %44 = vector.broadcast %cst_25 : f32 to vector<8x4xf32>
    %45 = arith.addf %43, %44 : vector<8x4xf32>
    %46 = math.log %45 : vector<8x4xf32>
    %47 = arith.subf %38, %46 : vector<8x4xf32>
    %cst_26 = arith.constant dense<0.000000e+00> : vector<8xf32>
    %48 = vector.multi_reduction <add>, %47, %cst_26 [1] : vector<8x4xf32> to vector<8xf32>
    %49 = vector.shape_cast %48 : vector<8xf32> to vector<8x1xf32>
    %cst_27 = arith.constant 3.67575407 : f32
    %50 = vector.broadcast %cst_27 : f32 to vector<8x1xf32>
    %51 = arith.subf %49, %50 : vector<8x1xf32>
    %cst_28 = arith.constant 0.000000e+00 : f32
    %52 = vector.broadcast %cst_28 : f32 to vector<8x115xf32>
    %53 = tpu.concatenate %33, %34, %28, %51, %52 in 1 : vector<8x4xf32>, vector<8x4xf32>, vector<8x4xf32>, vector<8x1xf32>, vector<8x115xf32> -> vector<8x128xf32>
    %c0_29 = arith.constant 0 : index
    %c0_30 = arith.constant 0 : index
    %54 = vector.load %arg9[%c0_29, %c0_30] : memref<8x128xf32, #tpu.memory_space<vmem>>, vector<8x128xf32>
    tpu.vector_store %arg9[%c0_29, %c0_30], %53 {strides = array<i32>} : memref<8x128xf32, #tpu.memory_space<vmem>>, vector<8x128xf32>,
    return
  }
  func.func @transform_0(%arg0: i32) -> (i32, i32) {
    %c0_i32 = arith.constant 0 : i32
    %c0_i32_0 = arith.constant 0 : i32
    return %arg0, %c0_i32 : i32, i32
  }
  func.func @transform_1(%arg0: i32) -> (i32, i32) {
    %c0_i32 = arith.constant 0 : i32
    %c0_i32_0 = arith.constant 0 : i32
    return %arg0, %c0_i32 : i32, i32
  }
  func.func @transform_2(%arg0: i32) -> (i32, i32) {
    %c0_i32 = arith.constant 0 : i32
    %c0_i32_0 = arith.constant 0 : i32
    %c0_i32_1 = arith.constant 0 : i32
    return %c0_i32, %c0_i32_0 : i32, i32
  }
  func.func @transform_3(%arg0: i32) -> (i32, i32) {
    %c0_i32 = arith.constant 0 : i32
    %c0_i32_0 = arith.constant 0 : i32
    %c0_i32_1 = arith.constant 0 : i32
    return %c0_i32, %c0_i32_0 : i32, i32
  }
  func.func @transform_4(%arg0: i32) -> (i32, i32) {
    %c0_i32 = arith.constant 0 : i32
    %c0_i32_0 = arith.constant 0 : i32
    %c0_i32_1 = arith.constant 0 : i32
    return %c0_i32, %c0_i32_0 : i32, i32
  }
  func.func @transform_5(%arg0: i32) -> (i32, i32) {
    %c0_i32 = arith.constant 0 : i32
    %c0_i32_0 = arith.constant 0 : i32
    %c0_i32_1 = arith.constant 0 : i32
    return %c0_i32, %c0_i32_0 : i32, i32
  }
  func.func @transform_6(%arg0: i32) -> (i32, i32) {
    %c0_i32 = arith.constant 0 : i32
    %c0_i32_0 = arith.constant 0 : i32
    %c0_i32_1 = arith.constant 0 : i32
    return %c0_i32, %c0_i32_0 : i32, i32
  }
  func.func @transform_7(%arg0: i32) -> (i32, i32) {
    %c0_i32 = arith.constant 0 : i32
    %c0_i32_0 = arith.constant 0 : i32
    %c0_i32_1 = arith.constant 0 : i32
    return %c0_i32, %c0_i32_0 : i32, i32
  }
  func.func @transform_8(%arg0: i32) -> (i32, i32) {
    %c0_i32 = arith.constant 0 : i32
    %c0_i32_0 = arith.constant 0 : i32
    return %arg0, %c0_i32 : i32, i32
  }
}

</mosaic_0001>

<bundles_post_ra>
// kernel: tpu_custom_call.1
= control target key start
LH: loop header
LB: loop body
LE: loop exit
PB: predicated region body
PF: predicated region fallthrough
CT: control target
= control target key end

     0   :  { %v449_v2 = vmov 0.0|0.0   ;;  %vm450_vm0 = vmmov 0   ;;  %v451_v4 = vmov 0.0   ;;  %s560_s0 = inlined_call_operand.vmem [shape: f32[8,16], index: 0, kind: input, shape index: {}]   ;;  %s561_s1 = inlined_call_operand.vmem [shape: f32[8,4], index: 1, kind: input, shape index: {}]   ;;  %s562_s2 = inlined_call_operand.vmem [shape: f32[16,32], index: 2, kind: input, shape index: {}]   ;;  %s563_s3 = inlined_call_operand.vmem [shape: f32[1,32], index: 3, kind: input, shape index: {}]   ;;  %s564_s4 = inlined_call_operand.vmem [shape: f32[32,32], index: 4, kind: input, shape index: {}]   ;;  %s565_s5 = inlined_call_operand.vmem [shape: f32[1,32], index: 5, kind: input, shape index: {}]   ;;  %s566_s6 = inlined_call_operand.vmem [shape: f32[32,8], index: 6, kind: input, shape index: {}]   ;;  %s567_s7 = inlined_call_operand.vmem [shape: f32[1,8], index: 7, kind: input, shape index: {}]   ;;  %s568_s8 = inlined_call_operand.hbm [shape: f32[8,128], index: 8, kind: output, shape index: {}]  }
   0x1   :  { %v31_v0 = vld [vmem:[%s562_s2] sm:$0xff]  ;;  %v32_v1 = vld [vmem:[%s562_s2 + $0x8] sm:$0xff]  ;;  %396 = vmatprep.subr.bf16.mxu0 %v449_v2  ;;  %371 = vmatprep.mubr.msk.f32.mxu0 %vm450_vm0, %v451_v4 }
   0x2   :  { %v397_v3 = vpack.c.bf16 %v32_v1, %v31_v0  ;;  %v115_v5 = vld [vmem:[%s564_s4] sm:$0xff]  ;;  %v116_v6 = vld [vmem:[%s564_s4 + $0x8] sm:$0xff]  ;;  %399 = vmatprep.subr.bf16.mxu1 %v449_v2  ;;  %382 = vmatprep.mubr.msk.f32.mxu1 %vm450_vm0, %v451_v4 }
   0x3   :  { %v400_v7 = vpack.c.bf16 %v116_v6, %v115_v5 }
   0x4   :  { %13 = vsyncpa [#allocation3], 0  ;;  %398 = vmatpush3.bf16.msra.mxu0 %v397_v3  ;;  %v30_v8 = vld [vmem:[%s560_s0] sm:$0xff]  ;;  %vm40_vm1 = vcmask 130048   ;;  %v117_v9 = vld [vmem:[%s564_s4 + $0x10] sm:$0xff]  ;;  %vm126_vm2 = vcmask 261120  }
   0x5   :  { %401 = vmatpush3.bf16.msra.mxu1 %v400_v7  ;;  %405 = vmatprep.subr.bf16.mxu0 %v449_v2  ;;  %v118_v10 = vld [vmem:[%s564_s4 + $0x18] sm:$0xff]  ;;  %v201_v12 = vld [vmem:[%s566_s6] sm:$0xff]  ;;  %v202_v13 = vld [vmem:[%s566_s6 + $0x8] sm:$0xff]  ;;  %vm313_vm3 = vcmask 31744   ;;  %vm326_vm4 = vcmask 64512   ;;  %vm328_vm5 = vcmask 97280  }
   0x6   :  { %402 = vmatprep.subr.bf16.mxu1 %v449_v2  ;;  %v403_v11 = vpack.c.bf16 %v118_v10, %v117_v9  ;;  %v406_v14 = vpack.c.bf16 %v202_v13, %v201_v12  ;;  %v347_v15 = vld [vmem:[%s563_s3] ss:$0 sm:$0xff]  ;;  %v203_v20 = vld [vmem:[%s566_s6 + $0x10] sm:$0xff]  ;;  %v204_v21 = vld [vmem:[%s566_s6 + $0x18] sm:$0xff]  ;;  %s453_s6 = smov 4   ;;  %vm330_vm6 = vcmask 105472  }
   0x7   :  { %372 = vmatmul.mubr.msk.f32.vlgmr.msra.gmra.mrb[0].mxu0 %vm40_vm1, %v30_v8  ;;  %v409_v22 = vpack.c.bf16 %v204_v21, %v203_v20  ;;  %v349_v23 = vld [vmem:[%s565_s5] ss:$0 sm:$0xff]  ;;  %s452_s5 = smov 124  }
   0x8   :  { %393 = vmatprep.mubr.msk.f32.mxu0 %vm450_vm0, %v451_v4  ;;  %407 = vmatpush3.bf16.msra.mxu0 %v406_v14  ;;  %v351_v28 = vld [vmem:[%s567_s7] ss:$0 sm:$0xff] }
   0x9   :  { %404 = vmatpush3.bf16.msra.mxu1 %v403_v11  ;;  %408 = vmatprep.subr.bf16.mxu0 %v449_v2  ;;  %v291_v38 = vld [vmem:[%s561_s1] sm:$0xff]  ;;  %s454_s1 = smov [#allocation2]  }
   0xa   :  { %v299_v47 = vmul.f32 -0.5, %v291_v38  ;;  %s339_s7 = sshll.u32 %s454_s1, 4  ;;  %s340_s7 = int_to_ptr.vmem [resolvable:$true] %s339_s7 }
   0xb   :  { %s425_s9 = scalar_lea.vmem %s340_s7, 128  ;;  %p430_p1 = scmp.lt.s32.totalorder %s340_s7, %s340_s7 }
   0xc   :  { %410 = vmatpush3.bf16.msra.mxu0 %v409_v22  ;;  %v300_v48 = vmul.f32 %v299_v47, %v291_v38  ;;  %p426_p0 = scmp.ne.s32.totalorder %s340_s7, %s425_s9  ;;  %p431_p2 = scmp.lt.s32.totalorder %s425_s9, %s425_s9 }
   0xe   :  { %p432_p3 = por %p431_p2, %p430_p1 }
  0x10   :  { %p433_p4 = pnand %p432_p3, %p426_p0 }
  0xda   :  { %v110_v16 = vpop.f32.mrb[0].mxu0 }
  0xdb   :  { %v111_v17 = vadd.f32 %v347_v15, %v110_v16  ;;  %v373_v18 = vpop.f32.mrb[1].mxu0 }
  0xdd   :  { %v114_v19 = vmax.f32 %v111_v17, 0.0 }
  0xdf   :  { %383 = vmatmul.mubr.msk.f32.vlgmr.msra.gmra.mrb[0].mxu1 %vm126_vm2, %v114_v19 }
 0x1b2   :  { %v196_v24 = vpop.f32.mrb[0].mxu1 }
 0x1b3   :  { %v197_v25 = vadd.f32 %v349_v23, %v196_v24  ;;  %v384_v26 = vpop.f32.mrb[1].mxu1 }
 0x1b5   :  { %v200_v27 = vmax.f32 %v197_v25, 0.0 }
 0x1b7   :  { %394 = vmatmul.mubr.msk.f32.vlgmr.msra.gmra.mrb[2].mxu0 %vm126_vm2, %v200_v27 }
 0x28a   :  { %v281_v29 = vpop.f32.mrb[2].mxu0 }
 0x28b   :  { %v282_v30 = vadd.f32 %v351_v28, %v281_v29  ;;  %v395_v31 = vpop.f32.mrb[3].mxu0 }
 0x28d   :  { %417 = vtanh.f32 %v282_v30 }
 0x297   :  { %v418_v32 = vpop.eup %417 }
 0x298   :  { %v286_v33 = vadd.f32 1.0, %v418_v32 }
 0x29a   :  { %v287_v34 = vmul.f32 6.0, %v286_v33 }
 0x29c   :  { %v288_v35 = vadd.f32 -10.0, %v287_v34 }
 0x29e   :  { %v289_v36 = vmul.f32 1.442695, %v288_v35 }
 0x2a0   :  { %419 = vpow2.f32 %v289_v36 }
 0x2aa   :  { %v420_v37 = vpop.eup %419 }
 0x2ab   :  { %293 = vrot.lane.b32.xlu0 %v420_v37, %s452_s5 }
 0x2af   :  { %302 = vrot.lane.b32.xlu0 %v288_v35, %s452_s5 }
 0x2b3   :  { %322 = vrot.lane.b32.xlu0 %v288_v35, %s453_s6 }
 0x31d   :  { %v294_v39 = vpop.permute.xlu0 %293 }
 0x31e   :  { %v296_v40 = vmul.f32 %v294_v39, %v291_v38 }
 0x320   :  { %v297_v41 = vadd.f32 %v296_v40, %v282_v30 }
 0x321   :  { %v303_v49 = vpop.permute.xlu0 %302 }
 0x322   :  { %421 = vtanh.f32 %v297_v41  ;;  %v305_v51 = vsub.f32 %v300_v48, %v303_v49 }
 0x325   :  { %v323_v57 = vpop.permute.xlu0 %322 }
 0x32c   :  { %v422_v42 = vpop.eup %421 }
 0x32d   :  { %v306_v43 = vmul.f32 %v422_v42, %v422_v42 }
 0x32f   :  { %v307_v44 = vsub.f32 1.0, %v306_v43 }
 0x331   :  { %v308_v45 = vmax.f32 %v307_v44, 0.0 }
 0x333   :  { %v309_v46 = vadd.f32 1e-06, %v308_v45 }
 0x335   :  { %423 = vlog2.f32 %v309_v46 }
 0x33f   :  { %v424_v50 = vpop.eup %423 }
 0x340   :  { %v311_v52 = vmul.f32 0.6931472, %v424_v50 }
 0x342   :  { %v312_v53 = vsub.f32 %v305_v51, %v311_v52 }
 0x344   :  { %v314_v54 = vsel %vm313_vm3, %v312_v53, 0.0 }
 0x345   :  { %315 = vadd.xlane.f32.xlu1 %v314_v54 }
 0x356   :  { %319 = vrot.lane.b32.xlu1 %v422_v42, %s453_s6 }
 0x3d2   :  { %v316_v55 = vpop.xlane.xlu1 %315 }
 0x3d3   :  { %v353_v58 = vadd.f32 -3.675754, %v316_v55 }
 0x3d6   :  { %v320_v56 = vpop.permute.xlu1 %319 }
 0x3d7   :  { %v325_v59 = vsel %vm313_vm3, %v418_v32, %v320_v56 }
 0x3d8   :  { %v327_v60 = vsel %vm326_vm4, %v325_v59, %v323_v57 }
 0x3d9   :  { %v329_v61 = vsel %vm328_vm5, %v327_v60, %v353_v58 }
 0x3da   :  { %v331_v62 = vsel %vm330_vm6, %v329_v61, 0.0 }
 0x3db   :  { %332 = vst [vmem:[#allocation2] sm:$0xff] %v331_v62 }
 0x3dc   :  { %436 = shalt.err (!%p433_p4)
}
 0x3dd   :  { %s437_s12 = scalar_lea.hbm %s568_s8, 128 }
 0x3de   :  { %p438_p5 = scmp.ne.s32.totalorder %s568_s8, %s437_s12  ;;  %p441_p6 = scmp.lt.u32.totalorder %s437_s12, %s568_s8 }
 0x3e0   :  { %p443_p7 = pnand %p441_p6, %p438_p5 }
 0x3e2   :  { %446 = shalt.err (!%p443_p7)
}
 0x3e3   :  { %342 = dma.vmem_to_hbm [thread:$0]  %s340_s7, 128, %s568_s8, [#allocation3]  }
 0x3e4   :  { %447 = dma.done.wait [#allocation3], 128  }
 0x3e5   :  { %448 = vsyncadd [#allocation3], 4294967168 }
 0x3e6   :  { %346 = vsyncpa [#allocation3], 1 }

</bundles_post_ra>
